<compile_context>
chip_gen: v5e
topology: v5e:2x2
jax: 0.10.0
libtpu: 0.0.40
codegen_flags: <defaults>
</compile_context>

<pallas_src>
import jax
import jax.numpy as jnp
from jax import lax
from jax.experimental import pallas as pl
from jax.experimental.pallas import tpu as pltpu
import numpy as np


def _round_up(n, m):
    return ((n + m - 1) // m) * m


def pack_lstm_params(w_ih, w_hh, b_ih, b_hh, matmul_dtype=jnp.bfloat16):
    """Pack PyTorch-layout LSTM params (call-invariant; hoist out of the
    per-call path in real use).  Gate order [i, f, g, o] stays contiguous
    along lanes; only trailing lanes (4H..Gp) are zero-padded."""
    D = w_ih.shape[1]
    H = w_hh.shape[1]
    G = 4 * H
    Gp = _round_up(G, 128)
    wih_p = jnp.zeros((D, Gp), matmul_dtype).at[:, :G].set(
        jnp.transpose(w_ih).astype(matmul_dtype))
    whh_p = jnp.zeros((H, Gp), matmul_dtype).at[:, :G].set(
        jnp.transpose(w_hh).astype(matmul_dtype))
    b_p = jnp.zeros((1, Gp), jnp.float32).at[0, :G].set(
        (b_ih + b_hh).astype(jnp.float32))
    return wih_p, whh_p, b_p


def lstm_kernel(x_ref, wih_ref, whh_ref, b_ref, y_ref, gx_sc, h_sc, c_sc):
    """One (batch-tile, time-chunk) grid step of the LSTM recurrence.

    x_ref:   (Tc, Bt, D)   time-major input chunk (matmul dtype)
    wih_ref: (D, Gp)       W_ih^T, gates contiguous [i|f|g|o] (+ zero pad)
    whh_ref: (H, Gp)       W_hh^T
    b_ref:   (1, Gp)       b_ih + b_hh (f32)
    y_ref:   (Tc, Bt, H)   hidden-state outputs (f32)
    gx_sc:   (Tc, Bt, Gp)  VMEM scratch: hoisted input projection
    h_sc/c_sc: (Bt, H)     recurrence state carried across time chunks
    """
    t_chunk = pl.program_id(1)
    Tc, Bt, D = x_ref.shape
    H = h_sc.shape[1]
    Gp = whh_ref.shape[1]

    # ---- Per-chunk prologue: hoisted input projection (one MXU matmul) ----
    # Bt == 8 so the leading-dim collapse is sublane-tile aligned (no copy).
    x_flat = x_ref[...].reshape(Tc * Bt, D)
    gx = jnp.dot(x_flat, wih_ref[...], preferred_element_type=jnp.float32)
    gx_sc[...] = (gx + b_ref[...]).reshape(Tc, Bt, Gp)

    # ---- Reset carried state at the first time chunk of each batch tile ----
    @pl.when(t_chunk == 0)
    def _():
        h_sc[...] = jnp.zeros_like(h_sc)
        c_sc[...] = jnp.zeros_like(c_sc)

    # Loop-invariant activation constants (hoisted out of the serial loop):
    # one whole-vreg tanh yields all four gates, using
    # sigmoid(x) = 0.5 + 0.5*tanh(0.5*x) for the i/f/o lanes.
    lane = lax.broadcasted_iota(jnp.int32, (Bt, Gp), 1)
    is_g = (lane >= 2 * H) & (lane < 3 * H)
    scale = jnp.where(is_g, 1.0, 0.5).astype(jnp.float32)
    offset = jnp.where(is_g, 0.0, 0.5).astype(jnp.float32)

    whh = whh_ref[...]                       # (H, Gp), loop invariant
    # TODO(synk): hold W_hh stationary in the MXU via pltpu.matmul_push_rhs /
    # matmul_acc_lhs / matmul_pop instead of re-streaming it each step.

    def step(t, carry):
        h, c = carry                                         # (Bt, H) f32
        gates = gx_sc[t] + jnp.dot(h.astype(whh.dtype), whh,
                                   preferred_element_type=jnp.float32)
        act = jnp.tanh(gates * scale) * scale + offset       # 1 EUP push
        i = act[:, 0 * H:1 * H]
        f = act[:, 1 * H:2 * H]
        g = act[:, 2 * H:3 * H]
        o = act[:, 3 * H:4 * H]
        c_new = f * c + i * g
        h_new = o * jnp.tanh(c_new)                          # 2nd EUP push
        y_ref[t] = h_new
        return h_new, c_new

    # Short fixed trip count per chunk: unroll so the LLO scheduler overlaps
    # the VPU epilogue of step t-1 with the MXU/EUP work of step t.  Gate the
    # unroll so a large chunk does not explode code size.
    h_fin, c_fin = lax.fori_loop(0, Tc, step, (h_sc[...], c_sc[...]),
                                 unroll=True if Tc <= 16 else 4)
    h_sc[...] = h_fin
    c_sc[...] = c_fin


def subnet_forward(x, w_ih, w_hh, b_ih, b_hh, *,
                   matmul_dtype=jnp.bfloat16, time_chunk=4):
    """SubNet.forward (eval mode): batch_first single-layer LSTM; Dropout=id.

    x: (B, T, D) or (T, D); w_ih: (4H, D); w_hh: (4H, H); b_*: (4H,).
    Returns y: (B, T, H) float32.  matmul_dtype=jnp.float32 gives strict fp32
    parity with PyTorch; the bfloat16 default keeps f32 accumulation/state but
    halves MXU passes and weight/x bytes.
    """
    if x.ndim == 2:                       # matches `x = x.unsqueeze(0)`
        x = x[None]
    B, T, D = x.shape
    H = w_hh.shape[1]
    G = 4 * H
    Gp = _round_up(G, 128)

    Bt = 8                                # batch tile = 8 sublanes
    Tc = max(1, min(time_chunk, T))       # time chunk (streamed by BlockSpec)
    Bp = _round_up(max(B, Bt), Bt)
    Tp = _round_up(T, Tc)

    # Call-invariant weight packing (hoist via pack_lstm_params in real use).
    wih_p, whh_p, b_p = pack_lstm_params(w_ih, w_hh, b_ih, b_hh, matmul_dtype)

    # Time-major, padded input.
    # TODO(synk): a batch-major BlockSpec layout would avoid these two
    # wrapper-side transposes of x and y; kept for kernel-layout simplicity.
    x_p = jnp.zeros((Tp, Bp, D), matmul_dtype)
    x_p = x_p.at[:T, :B, :].set(jnp.transpose(x, (1, 0, 2)).astype(matmul_dtype))

    grid = (Bp // Bt, Tp // Tc)           # (parallel batch tiles, serial time)

    it = jnp.dtype(matmul_dtype).itemsize
    flops = int(2 * Tp * Bp * D * Gp + 2 * Tp * Bp * H * Gp + 12 * Tp * Bp * Gp)
    transcendentals = int(Tp * Bp * (Gp + H))
    bytes_accessed = int(Tp * Bp * D * it + Tp * Bp * H * 4
                         + D * Gp * it + H * Gp * it + Gp * 4)

    # Scoped-VMEM budget: double-buffered blocks + scratch, with headroom.
    vmem_need = (2 * Tc * Bt * D * it + 2 * Tc * Bt * H * 4
                 + 2 * (D * Gp * it + H * Gp * it + Gp * 4)
                 + Tc * Bt * Gp * 4 + 2 * Bt * H * 4)
    vmem_limit = int(min(48 * 2**20, max(16 * 2**20, 4 * vmem_need)))

    y_p = pl.pallas_call(
        lstm_kernel,
        out_shape=jax.ShapeDtypeStruct((Tp, Bp, H), jnp.float32),
        grid_spec=pltpu.PrefetchScalarGridSpec(
            num_scalar_prefetch=0,
            grid=grid,
            in_specs=[
                pl.BlockSpec((Tc, Bt, D), lambda b, t: (t, b, 0)),   # x chunk
                pl.BlockSpec((D, Gp), lambda b, t: (0, 0)),          # W_ih^T
                pl.BlockSpec((H, Gp), lambda b, t: (0, 0)),          # W_hh^T
                pl.BlockSpec((1, Gp), lambda b, t: (0, 0)),          # bias
            ],
            out_specs=pl.BlockSpec((Tc, Bt, H), lambda b, t: (t, b, 0)),
            scratch_shapes=[
                pltpu.VMEM((Tc, Bt, Gp), jnp.float32),   # gx (hoisted proj)
                pltpu.VMEM((Bt, H), jnp.float32),        # h carry
                pltpu.VMEM((Bt, H), jnp.float32),        # c carry
            ],
        ),
        compiler_params=pltpu.CompilerParams(
            dimension_semantics=("parallel", "arbitrary"),
            vmem_limit_bytes=vmem_limit,
        ),
        cost_estimate=pl.CostEstimate(flops=flops,
                                      transcendentals=transcendentals,
                                      bytes_accessed=bytes_accessed),
    )(x_p, wih_p, whh_p, b_p)

    y = jnp.transpose(y_p[:T, :B, :], (1, 0, 2))          # (B, T, H)
    # nn.Dropout is identity in eval mode and the reshape pair in the
    # reference is shape-preserving, so y is already `all_y`.
    # TODO(synk): training-mode dropout (Bernoulli mask + 1/(1-p) scale) not
    # implemented; eval semantics only.
    return y


def _lstm_ref(x, w_ih, w_hh, b_ih, b_hh):
    """Pure-JAX reference (same math as torch.nn.LSTM forward, batch_first)."""
    B, T, D = x.shape
    H = w_hh.shape[1]
    b = b_ih + b_hh

    def step(carry, x_t):
        h, c = carry
        gates = x_t @ w_ih.T + h @ w_hh.T + b
        i = jax.nn.sigmoid(gates[:, 0 * H:1 * H])
        f = jax.nn.sigmoid(gates[:, 1 * H:2 * H])
        g = jnp.tanh(gates[:, 2 * H:3 * H])
        o = jax.nn.sigmoid(gates[:, 3 * H:4 * H])
        c = f * c + i * g
        h = o * jnp.tanh(c)
        return (h, c), h

    h0 = jnp.zeros((B, H), jnp.float32)
    c0 = jnp.zeros((B, H), jnp.float32)
    (_, _), ys = lax.scan(step, (h0, c0), jnp.transpose(x, (1, 0, 2)))
    return jnp.transpose(ys, (1, 0, 2))


if __name__ == "__main__":
    # Small shapes consistent with SubNet(in_size=16, hidden_size=32)
    B, T, D, H = 2, 8, 16, 32

    key = jax.random.PRNGKey(0)
    kx, k1, k2, k3, k4 = jax.random.split(key, 5)

    x = jax.random.normal(kx, (B, T, D), dtype=jnp.float32)

    # PyTorch LSTM init is U(-1/sqrt(H), 1/sqrt(H))
    s = 1.0 / np.sqrt(H)
    w_ih = jax.random.uniform(k1, (4 * H, D), jnp.float32, -s, s)
    w_hh = jax.random.uniform(k2, (4 * H, H), jnp.float32, -s, s)
    b_ih = jax.random.uniform(k3, (4 * H,), jnp.float32, -s, s)
    b_hh = jax.random.uniform(k4, (4 * H,), jnp.float32, -s, s)

    y_ref = _lstm_ref(x, w_ih, w_hh, b_ih, b_hh)

    # Strict fp32 parity path (matches PyTorch numerics); time_chunk=4 makes
    # T=8 run as two chunks, exercising the carried h/c state across the grid.
    y_f32 = subnet_forward(x, w_ih, w_hh, b_ih, b_hh,
                           matmul_dtype=jnp.float32, time_chunk=4)
    y_f32 = jax.block_until_ready(y_f32)
    np.testing.assert_allclose(np.asarray(y_f32), np.asarray(y_ref),
                               rtol=1e-4, atol=1e-4)
    assert y_f32.shape == (B, T, H)

    # Default fast path: bf16 MXU inputs, f32 accumulation and f32 h/c state.
    y_bf16 = subnet_forward(x, w_ih, w_hh, b_ih, b_hh)
    y_bf16 = jax.block_until_ready(y_bf16)
    np.testing.assert_allclose(np.asarray(y_bf16), np.asarray(y_ref),
                               rtol=0.1, atol=0.1)
    assert y_bf16.shape == (B, T, H)

    print("KERNEL_OK")
</pallas_src>

<mosaic_0001>
module attributes {stable_mosaic.version = 11 : i64} {
  func.func @lstm_kernel(%arg0: i32, %arg1: i32, %arg2: memref<4x8x16xf32, #tpu.memory_space<vmem>>, %arg3: memref<16x128xf32, #tpu.memory_space<vmem>>, %arg4: memref<32x128xf32, #tpu.memory_space<vmem>>, %arg5: memref<1x128xf32, #tpu.memory_space<vmem>>, %arg6: memref<4x8x32xf32, #tpu.memory_space<vmem>>, %arg7: memref<4x8x128xf32, #tpu.memory_space<vmem>>, %arg8: memref<8x32xf32, #tpu.memory_space<vmem>>, %arg9: memref<8x32xf32, #tpu.memory_space<vmem>>) attributes {dimension_semantics = [#tpu.dimension_semantics<parallel>, #tpu.dimension_semantics<arbitrary>], iteration_bounds = array<i64: 1, 2>, scalar_prefetch = 0 : i64, scratch_operands = 3 : i64, tpu.core_type = #tpu.core_type<tc>, window_params = [{transform_indices = @transform_0, window_bounds = array<i64: 4, 8, 16>}, {pipeline_mode = #tpu.pipeline_mode<synchronous>, transform_indices = @transform_1, window_bounds = array<i64: 16, 128>}, {pipeline_mode = #tpu.pipeline_mode<synchronous>, transform_indices = @transform_2, window_bounds = array<i64: 32, 128>}, {pipeline_mode = #tpu.pipeline_mode<synchronous>, transform_indices = @transform_3, window_bounds = array<i64: 1, 128>}, {transform_indices = @transform_4, window_bounds = array<i64: 4, 8, 32>}]} {
    %c0 = arith.constant 0 : index
    %c0_0 = arith.constant 0 : index
    %c0_1 = arith.constant 0 : index
    %0 = vector.load %arg2[%c0, %c0_0, %c0_1] : memref<4x8x16xf32, #tpu.memory_space<vmem>>, vector<4x8x16xf32>
    %1 = vector.shape_cast %0 : vector<4x8x16xf32> to vector<32x16xf32>
    %c0_2 = arith.constant 0 : index
    %c0_3 = arith.constant 0 : index
    %2 = vector.load %arg3[%c0_2, %c0_3] : memref<16x128xf32, #tpu.memory_space<vmem>>, vector<16x128xf32>
    %cst = arith.constant dense<0.000000e+00> : vector<32x128xf32>
    %3 = tpu.matmul %1, %2, %cst {dimension_numbers = #tpu.dot_dimension_numbers<[1], [0], [0], [1], [0, 0, 1, 1], [], []>} : vector<32x16xf32>, vector<16x128xf32>, vector<32x128xf32> -> vector<32x128xf32>
    %c0_4 = arith.constant 0 : index
    %c0_5 = arith.constant 0 : index
    %4 = vector.load %arg5[%c0_4, %c0_5] : memref<1x128xf32, #tpu.memory_space<vmem>>, vector<1x128xf32>
    %5 = vector.broadcast %4 : vector<1x128xf32> to vector<32x128xf32>
    %6 = arith.addf %3, %5 : vector<32x128xf32>
    %7 = vector.shape_cast %6 : vector<32x128xf32> to vector<4x8x128xf32>
    %c0_6 = arith.constant 0 : index
    %c0_7 = arith.constant 0 : index
    %c0_8 = arith.constant 0 : index
    %8 = vector.load %arg7[%c0_6, %c0_7, %c0_8] : memref<4x8x128xf32, #tpu.memory_space<vmem>>, vector<4x8x128xf32>
    tpu.vector_store %arg7[%c0_6, %c0_7, %c0_8], %7 {strides = array<i32>} : memref<4x8x128xf32, #tpu.memory_space<vmem>>, vector<4x8x128xf32>,
    %c0_i32 = arith.constant 0 : i32
    %9 = arith.cmpi eq, %arg1, %c0_i32 : i32
    %10 = arith.extui %9 : i1 to i32
    %c0_i32_9 = arith.constant 0 : i32
    %11 = arith.cmpi ne, %10, %c0_i32_9 : i32
    scf.if %11 {
      %cst_45 = arith.constant 0.000000e+00 : f32
      %117 = vector.broadcast %cst_45 : f32 to vector<8x32xf32>
      %c0_46 = arith.constant 0 : index
      %c0_47 = arith.constant 0 : index
      %118 = vector.load %arg8[%c0_46, %c0_47] : memref<8x32xf32, #tpu.memory_space<vmem>>, vector<8x32xf32>
      tpu.vector_store %arg8[%c0_46, %c0_47], %117 {strides = array<i32>} : memref<8x32xf32, #tpu.memory_space<vmem>>, vector<8x32xf32>,
      %cst_48 = arith.constant 0.000000e+00 : f32
      %119 = vector.broadcast %cst_48 : f32 to vector<8x32xf32>
      %c0_49 = arith.constant 0 : index
      %c0_50 = arith.constant 0 : index
      %120 = vector.load %arg9[%c0_49, %c0_50] : memref<8x32xf32, #tpu.memory_space<vmem>>, vector<8x32xf32>
      tpu.vector_store %arg9[%c0_49, %c0_50], %119 {strides = array<i32>} : memref<8x32xf32, #tpu.memory_space<vmem>>, vector<8x32xf32>,
    } else {
    }
    %12 = tpu.iota {dimensions = array<i32: 1>} : vector<8x128xi32>
    %c64_i32 = arith.constant 64 : i32
    %13 = vector.broadcast %c64_i32 : i32 to vector<8x128xi32>
    %14 = arith.cmpi sge, %12, %13 : vector<8x128xi32>
    %c96_i32 = arith.constant 96 : i32
    %15 = vector.broadcast %c96_i32 : i32 to vector<8x128xi32>
    %16 = arith.cmpi slt, %12, %15 : vector<8x128xi32>
    %17 = arith.andi %14, %16 : vector<8x128xi1>
    %cst_10 = arith.constant 1.000000e+00 : f32
    %cst_11 = arith.constant 5.000000e-01 : f32
    %18 = vector.broadcast %cst_10 : f32 to vector<8x128xf32>
    %19 = vector.broadcast %cst_11 : f32 to vector<8x128xf32>
    %20 = arith.select %17, %18, %19 : vector<8x128xi1>, vector<8x128xf32>
    %cst_12 = arith.constant 0.000000e+00 : f32
    %cst_13 = arith.constant 5.000000e-01 : f32
    %21 = vector.broadcast %cst_12 : f32 to vector<8x128xf32>
    %22 = vector.broadcast %cst_13 : f32 to vector<8x128xf32>
    %23 = arith.select %17, %21, %22 : vector<8x128xi1>, vector<8x128xf32>
    %c0_14 = arith.constant 0 : index
    %c0_15 = arith.constant 0 : index
    %24 = vector.load %arg4[%c0_14, %c0_15] : memref<32x128xf32, #tpu.memory_space<vmem>>, vector<32x128xf32>
    %c0_16 = arith.constant 0 : index
    %c0_17 = arith.constant 0 : index
    %25 = vector.load %arg8[%c0_16, %c0_17] : memref<8x32xf32, #tpu.memory_space<vmem>>, vector<8x32xf32>
    %c0_18 = arith.constant 0 : index
    %c0_19 = arith.constant 0 : index
    %26 = vector.load %arg9[%c0_18, %c0_19] : memref<8x32xf32, #tpu.memory_space<vmem>>, vector<8x32xf32>
    %c0_i32_20 = arith.constant 0 : i32
    %27 = arith.index_cast %c0_i32_20 : i32 to index
    %c0_21 = arith.constant 0 : index
    %c0_22 = arith.constant 0 : index
    %28 = vector.load %arg7[%27, %c0_21, %c0_22] : memref<4x8x128xf32, #tpu.memory_space<vmem>>, vector<1x8x128xf32>
    %29 = vector.shape_cast %28 : vector<1x8x128xf32> to vector<8x128xf32>
    %cst_23 = arith.constant dense<0.000000e+00> : vector<8x128xf32>
    %30 = tpu.matmul %25, %24, %cst_23 {dimension_numbers = #tpu.dot_dimension_numbers<[1], [0], [0], [1], [0, 0, 1, 1], [], []>} : vector<8x32xf32>, vector<32x128xf32>, vector<8x128xf32> -> vector<8x128xf32>
    %31 = arith.addf %29, %30 : vector<8x128xf32>
    %32 = arith.mulf %31, %20 : vector<8x128xf32>
    %33 = math.tanh %32 : vector<8x128xf32>
    %34 = arith.mulf %33, %20 : vector<8x128xf32>
    %35 = arith.addf %34, %23 : vector<8x128xf32>
    %36 = vector.extract_strided_slice %35 {offsets = [0, 0], sizes = [8, 32], strides = [1, 1]} : vector<8x128xf32> to vector<8x32xf32>
    %37 = vector.extract_strided_slice %35 {offsets = [0, 32], sizes = [8, 32], strides = [1, 1]} : vector<8x128xf32> to vector<8x32xf32>
    %38 = vector.extract_strided_slice %35 {offsets = [0, 64], sizes = [8, 32], strides = [1, 1]} : vector<8x128xf32> to vector<8x32xf32>
    %39 = vector.extract_strided_slice %35 {offsets = [0, 96], sizes = [8, 32], strides = [1, 1]} : vector<8x128xf32> to vector<8x32xf32>
    %40 = arith.mulf %37, %26 : vector<8x32xf32>
    %41 = arith.mulf %36, %38 : vector<8x32xf32>
    %42 = arith.addf %40, %41 : vector<8x32xf32>
    %43 = math.tanh %42 : vector<8x32xf32>
    %44 = arith.mulf %39, %43 : vector<8x32xf32>
    %45 = arith.index_cast %c0_i32_20 : i32 to index
    %c0_24 = arith.constant 0 : index
    %c0_25 = arith.constant 0 : index
    %46 = vector.load %arg6[%45, %c0_24, %c0_25] : memref<4x8x32xf32, #tpu.memory_space<vmem>>, vector<1x8x32xf32>
    %47 = vector.shape_cast %46 : vector<1x8x32xf32> to vector<8x32xf32>
    %48 = vector.shape_cast %44 : vector<8x32xf32> to vector<1x8x32xf32>
    tpu.vector_store %arg6[%45, %c0_24, %c0_25], %48 {strides = array<i32>} : memref<4x8x32xf32, #tpu.memory_space<vmem>>, vector<1x8x32xf32>,
    %c1_i32 = arith.constant 1 : i32
    %49 = arith.index_cast %c1_i32 : i32 to index
    %c0_26 = arith.constant 0 : index
    %c0_27 = arith.constant 0 : index
    %50 = vector.load %arg7[%49, %c0_26, %c0_27] : memref<4x8x128xf32, #tpu.memory_space<vmem>>, vector<1x8x128xf32>
    %51 = vector.shape_cast %50 : vector<1x8x128xf32> to vector<8x128xf32>
    %cst_28 = arith.constant dense<0.000000e+00> : vector<8x128xf32>
    %52 = tpu.matmul %44, %24, %cst_28 {dimension_numbers = #tpu.dot_dimension_numbers<[1], [0], [0], [1], [0, 0, 1, 1], [], []>} : vector<8x32xf32>, vector<32x128xf32>, vector<8x128xf32> -> vector<8x128xf32>
    %53 = arith.addf %51, %52 : vector<8x128xf32>
    %54 = arith.mulf %53, %20 : vector<8x128xf32>
    %55 = math.tanh %54 : vector<8x128xf32>
    %56 = arith.mulf %55, %20 : vector<8x128xf32>
    %57 = arith.addf %56, %23 : vector<8x128xf32>
    %58 = vector.extract_strided_slice %57 {offsets = [0, 0], sizes = [8, 32], strides = [1, 1]} : vector<8x128xf32> to vector<8x32xf32>
    %59 = vector.extract_strided_slice %57 {offsets = [0, 32], sizes = [8, 32], strides = [1, 1]} : vector<8x128xf32> to vector<8x32xf32>
    %60 = vector.extract_strided_slice %57 {offsets = [0, 64], sizes = [8, 32], strides = [1, 1]} : vector<8x128xf32> to vector<8x32xf32>
    %61 = vector.extract_strided_slice %57 {offsets = [0, 96], sizes = [8, 32], strides = [1, 1]} : vector<8x128xf32> to vector<8x32xf32>
    %62 = arith.mulf %59, %42 : vector<8x32xf32>
    %63 = arith.mulf %58, %60 : vector<8x32xf32>
    %64 = arith.addf %62, %63 : vector<8x32xf32>
    %65 = math.tanh %64 : vector<8x32xf32>
    %66 = arith.mulf %61, %65 : vector<8x32xf32>
    %67 = arith.index_cast %c1_i32 : i32 to index
    %c0_29 = arith.constant 0 : index
    %c0_30 = arith.constant 0 : index
    %68 = vector.load %arg6[%67, %c0_29, %c0_30] : memref<4x8x32xf32, #tpu.memory_space<vmem>>, vector<1x8x32xf32>
    %69 = vector.shape_cast %68 : vector<1x8x32xf32> to vector<8x32xf32>
    %70 = vector.shape_cast %66 : vector<8x32xf32> to vector<1x8x32xf32>
    tpu.vector_store %arg6[%67, %c0_29, %c0_30], %70 {strides = array<i32>} : memref<4x8x32xf32, #tpu.memory_space<vmem>>, vector<1x8x32xf32>,
    %c2_i32 = arith.constant 2 : i32
    %71 = arith.index_cast %c2_i32 : i32 to index
    %c0_31 = arith.constant 0 : index
    %c0_32 = arith.constant 0 : index
    %72 = vector.load %arg7[%71, %c0_31, %c0_32] : memref<4x8x128xf32, #tpu.memory_space<vmem>>, vector<1x8x128xf32>
    %73 = vector.shape_cast %72 : vector<1x8x128xf32> to vector<8x128xf32>
    %cst_33 = arith.constant dense<0.000000e+00> : vector<8x128xf32>
    %74 = tpu.matmul %66, %24, %cst_33 {dimension_numbers = #tpu.dot_dimension_numbers<[1], [0], [0], [1], [0, 0, 1, 1], [], []>} : vector<8x32xf32>, vector<32x128xf32>, vector<8x128xf32> -> vector<8x128xf32>
    %75 = arith.addf %73, %74 : vector<8x128xf32>
    %76 = arith.mulf %75, %20 : vector<8x128xf32>
    %77 = math.tanh %76 : vector<8x128xf32>
    %78 = arith.mulf %77, %20 : vector<8x128xf32>
    %79 = arith.addf %78, %23 : vector<8x128xf32>
    %80 = vector.extract_strided_slice %79 {offsets = [0, 0], sizes = [8, 32], strides = [1, 1]} : vector<8x128xf32> to vector<8x32xf32>
    %81 = vector.extract_strided_slice %79 {offsets = [0, 32], sizes = [8, 32], strides = [1, 1]} : vector<8x128xf32> to vector<8x32xf32>
    %82 = vector.extract_strided_slice %79 {offsets = [0, 64], sizes = [8, 32], strides = [1, 1]} : vector<8x128xf32> to vector<8x32xf32>
    %83 = vector.extract_strided_slice %79 {offsets = [0, 96], sizes = [8, 32], strides = [1, 1]} : vector<8x128xf32> to vector<8x32xf32>
    %84 = arith.mulf %81, %64 : vector<8x32xf32>
    %85 = arith.mulf %80, %82 : vector<8x32xf32>
    %86 = arith.addf %84, %85 : vector<8x32xf32>
    %87 = math.tanh %86 : vector<8x32xf32>
    %88 = arith.mulf %83, %87 : vector<8x32xf32>
    %89 = arith.index_cast %c2_i32 : i32 to index
    %c0_34 = arith.constant 0 : index
    %c0_35 = arith.constant 0 : index
    %90 = vector.load %arg6[%89, %c0_34, %c0_35] : memref<4x8x32xf32, #tpu.memory_space<vmem>>, vector<1x8x32xf32>
    %91 = vector.shape_cast %90 : vector<1x8x32xf32> to vector<8x32xf32>
    %92 = vector.shape_cast %88 : vector<8x32xf32> to vector<1x8x32xf32>
    tpu.vector_store %arg6[%89, %c0_34, %c0_35], %92 {strides = array<i32>} : memref<4x8x32xf32, #tpu.memory_space<vmem>>, vector<1x8x32xf32>,
    %c3_i32 = arith.constant 3 : i32
    %93 = arith.index_cast %c3_i32 : i32 to index
    %c0_36 = arith.constant 0 : index
    %c0_37 = arith.constant 0 : index
    %94 = vector.load %arg7[%93, %c0_36, %c0_37] : memref<4x8x128xf32, #tpu.memory_space<vmem>>, vector<1x8x128xf32>
    %95 = vector.shape_cast %94 : vector<1x8x128xf32> to vector<8x128xf32>
    %cst_38 = arith.constant dense<0.000000e+00> : vector<8x128xf32>
    %96 = tpu.matmul %88, %24, %cst_38 {dimension_numbers = #tpu.dot_dimension_numbers<[1], [0], [0], [1], [0, 0, 1, 1], [], []>} : vector<8x32xf32>, vector<32x128xf32>, vector<8x128xf32> -> vector<8x128xf32>
    %97 = arith.addf %95, %96 : vector<8x128xf32>
    %98 = arith.mulf %97, %20 : vector<8x128xf32>
    %99 = math.tanh %98 : vector<8x128xf32>
    %100 = arith.mulf %99, %20 : vector<8x128xf32>
    %101 = arith.addf %100, %23 : vector<8x128xf32>
    %102 = vector.extract_strided_slice %101 {offsets = [0, 0], sizes = [8, 32], strides = [1, 1]} : vector<8x128xf32> to vector<8x32xf32>
    %103 = vector.extract_strided_slice %101 {offsets = [0, 32], sizes = [8, 32], strides = [1, 1]} : vector<8x128xf32> to vector<8x32xf32>
    %104 = vector.extract_strided_slice %101 {offsets = [0, 64], sizes = [8, 32], strides = [1, 1]} : vector<8x128xf32> to vector<8x32xf32>
    %105 = vector.extract_strided_slice %101 {offsets = [0, 96], sizes = [8, 32], strides = [1, 1]} : vector<8x128xf32> to vector<8x32xf32>
    %106 = arith.mulf %103, %86 : vector<8x32xf32>
    %107 = arith.mulf %102, %104 : vector<8x32xf32>
    %108 = arith.addf %106, %107 : vector<8x32xf32>
    %109 = math.tanh %108 : vector<8x32xf32>
    %110 = arith.mulf %105, %109 : vector<8x32xf32>
    %111 = arith.index_cast %c3_i32 : i32 to index
    %c0_39 = arith.constant 0 : index
    %c0_40 = arith.constant 0 : index
    %112 = vector.load %arg6[%111, %c0_39, %c0_40] : memref<4x8x32xf32, #tpu.memory_space<vmem>>, vector<1x8x32xf32>
    %113 = vector.shape_cast %112 : vector<1x8x32xf32> to vector<8x32xf32>
    %114 = vector.shape_cast %110 : vector<8x32xf32> to vector<1x8x32xf32>
    tpu.vector_store %arg6[%111, %c0_39, %c0_40], %114 {strides = array<i32>} : memref<4x8x32xf32, #tpu.memory_space<vmem>>, vector<1x8x32xf32>,
    %c4_i32 = arith.constant 4 : i32
    %c0_41 = arith.constant 0 : index
    %c0_42 = arith.constant 0 : index
    %115 = vector.load %arg8[%c0_41, %c0_42] : memref<8x32xf32, #tpu.memory_space<vmem>>, vector<8x32xf32>
    tpu.vector_store %arg8[%c0_41, %c0_42], %110 {strides = array<i32>} : memref<8x32xf32, #tpu.memory_space<vmem>>, vector<8x32xf32>,
    %c0_43 = arith.constant 0 : index
    %c0_44 = arith.constant 0 : index
    %116 = vector.load %arg9[%c0_43, %c0_44] : memref<8x32xf32, #tpu.memory_space<vmem>>, vector<8x32xf32>
    tpu.vector_store %arg9[%c0_43, %c0_44], %108 {strides = array<i32>} : memref<8x32xf32, #tpu.memory_space<vmem>>, vector<8x32xf32>,
    return
  }
  func.func @transform_0(%arg0: i32, %arg1: i32) -> (i32, i32, i32) {
    %c0_i32 = arith.constant 0 : i32
    %c0_i32_0 = arith.constant 0 : i32
    return %arg1, %arg0, %c0_i32 : i32, i32, i32
  }
  func.func @transform_1(%arg0: i32, %arg1: i32) -> (i32, i32) {
    %c0_i32 = arith.constant 0 : i32
    %c0_i32_0 = arith.constant 0 : i32
    %c0_i32_1 = arith.constant 0 : i32
    return %c0_i32, %c0_i32_0 : i32, i32
  }
  func.func @transform_2(%arg0: i32, %arg1: i32) -> (i32, i32) {
    %c0_i32 = arith.constant 0 : i32
    %c0_i32_0 = arith.constant 0 : i32
    %c0_i32_1 = arith.constant 0 : i32
    return %c0_i32, %c0_i32_0 : i32, i32
  }
  func.func @transform_3(%arg0: i32, %arg1: i32) -> (i32, i32) {
    %c0_i32 = arith.constant 0 : i32
    %c0_i32_0 = arith.constant 0 : i32
    %c0_i32_1 = arith.constant 0 : i32
    return %c0_i32, %c0_i32_0 : i32, i32
  }
  func.func @transform_4(%arg0: i32, %arg1: i32) -> (i32, i32, i32) {
    %c0_i32 = arith.constant 0 : i32
    %c0_i32_0 = arith.constant 0 : i32
    return %arg1, %arg0, %c0_i32 : i32, i32, i32
  }
}

</mosaic_0001>

<bundles_post_ra>
// kernel: tpu_custom_call.1
= control target key start
LH: loop header
LB: loop body
LE: loop exit
PB: predicated region body
PF: predicated region fallthrough
CT: control target
= control target key end

     0   :  { %s1256_s0 = inlined_call_operand.hbm [shape: f32[8,8,16], index: 0, kind: input, shape index: {}]   ;;  %s1257_s1 = inlined_call_operand.hbm [shape: f32[16,128], index: 1, kind: input, shape index: {}]   ;;  %s1258_s2 = inlined_call_operand.hbm [shape: f32[32,128], index: 2, kind: input, shape index: {}]   ;;  %s1259_s3 = inlined_call_operand.vmem [shape: f32[1,128], index: 3, kind: input, shape index: {}]   ;;  %s1260_s4 = inlined_call_operand.hbm [shape: f32[8,8,32], index: 4, kind: output, shape index: {}]  }
   0x1   :  { %1262 = sst [smem:[#allocation15_spill]] %s1257_s1 }
   0x2   :  { %9 = vsyncpa [#allocation6], 0 }
   0x3   :  { %11 = vsyncpa [#allocation6 + $0x1], 0 }
   0x4   :  { %12 = vsyncpa [#allocation9], 0 }
   0x5   :  { %13 = vsyncpa [#allocation7], 0 }
   0x6   :  { %15 = vsyncpa [#allocation7 + $0x1], 0  ;;  %s1043_s15 = smov 0   ;;  %s1045_s16 = smov 0  }
   0x7   :  { %s1047_s17 = smov 0   ;;  %s1049_s18 = smov 0  }
   0x8   :  { %s1051_s19 = smov 0   ;;  %s1053_s20 = smov 0  }
   0x9 LB: > { %s685_s21 = sadd.s32 4294967295, %s1005_s20   ;;  %s686_s22 = sadd.s32 4294967294, %s1005_s20   ;;  %s1005_s20 = sphi %s1053_s20, %s21_s20   ;;  %s1001_s19 = sphi %s1051_s19, %s1274_s19   ;;  %s997_s18 = sphi %s1049_s18, %s1273_s18   ;;  %s993_s17 = sphi %s1047_s17, %s1272_s17   ;;  %s989_s16 = sphi %s1045_s16, %s1271_s16   ;;  %s985_s15 = sphi %s1043_s15, %s1270_s15  }
   0xa   : > { %p55_p0 = scmp.ne.s32.totalorder %s989_s16, %s985_s15  ;;  %p1079_p1 = scmp.eq.s32.totalorder %s685_s21, 0 }
   0xb   : > { %p150_p2 = scmp.eq.s32.totalorder %s686_s22, 1  ;;  %p687_p4 = scmp.ge.s32.totalorder %s1005_s20, 1 }
   0xc   : > { %p1085_p3 = por %p1079_p1, %p55_p0  ;;  %p157_p6 = scmp.lt.s32.totalorder %s1005_s20, 3 }
   0xd   : > { %p1090_p5 = por %p150_p2, %p55_p0  ;;  %s1266_s1 = sld [smem:[#allocation15_spill]] }
   0xe   : > { %p1098_p7 = pnand %p687_p4, %p157_p6  ;;  %s1007_s30 = smov [#allocation8]  }
   0xf   : > { %s170_s5 = sshll.u32 %s1007_s30, 4  ;;  %p690_p10 = scmp.ge.s32.totalorder %s1005_s20, 2  ;;  %s171_s5 = int_to_ptr.vmem [resolvable:$true] %s170_s5 }
  0x10   : > { %p732_p8 = pneg %p1098_p7  ;;  %s182_s8 = sshll.u32 %s1258_s2, 4  ;;  %s183_s8 = int_to_ptr.hbm [resolvable:$true] %s182_s8 }
  0x11   : > { %s1261_s9 = smov 128   ;;  %s1009_s10 = smov 8  }
  0x12   : > { %p733_p9 = pnand %p732_p8, %p1079_p1  ;;  %s1010_s11 = smov [#allocation10]  }
  0x13   : > { %s168_s28 = sshll.u32 %s1266_s1, 4  ;;  %s184_s12 = sshll.u32 %s1010_s11, 4  ;;  %s169_s28 = int_to_ptr.hbm [resolvable:$true] %s168_s28  ;;  %s185_s12 = int_to_ptr.vmem [resolvable:$true] %s184_s12 }
  0x14   : > { %735 = dma.hbm_to_vmem [thread:$0]  (!%p733_p9), %s169_s28, 256, %s171_s5, [#allocation9], %s1261_s9, %s1261_s9, %s1009_s10  }
  0x15   : > { %738 = dma.hbm_to_vmem [thread:$0]  (!%p733_p9), %s183_s8, 512, %s185_s12, [#allocation9], %s1261_s9, %s1261_s9, %s1009_s10  }
  0x16   : > { %p144_p11 = scmp.eq.s32.totalorder %s685_s21, 1  ;;  %s30_s13 = sadd.s32 1, %s1001_s19 }
  0x17   : > { %p31_p12 = scmp.ge.s32.totalorder %s30_s13, 2  ;;  %s42_s14 = sadd.s32 1, %s993_s17 }
  0x18   : > { %p49_p13 = scmp.ne.s32.totalorder %s993_s17, %s989_s16  ;;  %p50_p0 = scmp.eq.s32.totalorder %s1005_s20, 0 }
  0x19   : > { %s1276_s13 = smov (%p31_p12, %s30_s13), 0  ;;  %p749_p4 = scmp.lt.s32.totalorder %s1005_s20, 2 }
  0x1a   : > { %p1125_p2 = por %p144_p11, %p49_p13  ;;  %s37_s26 = ssub.s32 %s1001_s19, %s1276_s13 }
  0x1b   : > { %s201_s27 = sand.u32 1, %s993_s17   ;;  %p40_p6 = scmp.eq.s32.totalorder %s37_s26, 0 }
  0x1c   : > { %p51_p8 = por %p50_p0, %p49_p13  ;;  %s691_s28 = sshll.u32 %s201_s27, 5 }
  0x1d   : > { %s716_s21 = sshll.u32 %s1001_s19, 5  ;;  %s205_s11 = scalar_lea.vmem [#allocation5], %s691_s28 }
  0x1e   : > { %s1135_s30 = scalar_select %p40_p6, %s993_s17, %s42_s14  }
  0x1f   : > { %s211_s7 = scalar_lea.hbm %s1256_s0, %s716_s21  ;;  %s214_s12 = sshll.u32 %s205_s11, 4  ;;  %s215_s12 = int_to_ptr.vmem [resolvable:$true] %s214_s12 }
  0x20   : > { %s212_s8 = sshll.u32 %s211_s7, 4  ;;  %p740_p9 = pnand %p749_p4, %p51_p8  ;;  %s213_s8 = int_to_ptr.hbm [resolvable:$true] %s212_s8 }
  0x21   : > { %s202_s9 = scalar_lea.sflag [#allocation6], %s201_s27  ;;  %s1269_s1 = smov 128  }
  0x22   : > { %742 = dma.hbm_to_vmem [thread:$0]  (!%p740_p9), %s213_s8, 512, %s215_s12, %s202_s9, %s1269_s1, %s1269_s1, %s1009_s10  }
  0x23   : > { %226 = sbr.rel (%p1098_p7) target bundleno = 2556 (0x9fc), region = 36  ;;  %s1148_s14 = sand.u32 (!%p1098_p7), 1, %s989_s16  }
  0x24   : > { %s695_s26 = sshll.u32 (!%p1098_p7), %s1148_s14, 5  ;;  %s229_s28 = scalar_lea.sflag (!%p1098_p7), [#allocation6], %s1148_s14 }
  0x25   : > { %s232_s21 = scalar_lea.vmem (!%p1098_p7), [#allocation5], %s695_s26 }
  0x28   : > { %972 = dma.done.wait (%p1085_p3), %s229_s28, 512  }
  0x29   : > { %974 = vsyncadd (%p1085_p3), %s229_s28, 4294966784 }
  0x2a   : > { %976 = dma.done.wait (%p1079_p1), [#allocation9], 768  }
  0x2b   : > { %978 = vsyncadd (%p1079_p1), [#allocation9], 4294966528  ;;  %v275_v0 = vld [vmem:[#allocation8 + $0x8] sm:$0xff]  ;;  %v274_v1 = vld [vmem:[#allocation8] sm:$0xff]  ;;  %vm280_vm0 = vcmask 130048   ;;  %s1167_s23 = scalar_lea.vmem [#allocation11], %s695_s26 }
  0x2c   : > { %307 = vmatpush.msra.mxu0 %v275_v0  ;;  %v270_v2 = vld [vmem:[%s232_s21] sm:$0xff]  ;;  %718 = vmatpush.msra.mxu2 %v275_v0  ;;  %v273_v3 = vld [vmem:[%s232_s21 + $0x18] sm:$0xff]  ;;  %v271_v4 = vld [vmem:[%s232_s21 + $0x8] sm:$0xff]  ;;  %p703_p1 = scmp.ne.s32.totalorder %s997_s18, 0 }
  0x2d   : > { %v272_v5 = vld [vmem:[%s232_s21 + $0x10] sm:$0xff] }
  0x2e   : > { %308 = vmatpush.msra.mxu0 %v274_v1  ;;  %719 = vmatpush.msra.mxu2 %v274_v1  ;;  %v812_v6 = vld [vmem:[%s1259_s3] ss:$0 sm:$0xff] }
  0x2f   : > { %699 = vmatmul.msk.f32.vlgmr.msra.gmra.mxu0 %vm280_vm0, %v270_v2  ;;  %702 = vmatmul.msk.f32.vlgmr.msra.gmra.mxu2 %vm280_vm0, %v273_v3 }
  0x37   : > { %700 = vmatmul.msk.f32.gmra.mxu0 %vm280_vm0, %v271_v4 }
  0x3f   : > { %701 = vmatmul.msk.f32.gmra.mxu0 %vm280_vm0, %v272_v5 }
  0xac   : > { %v310_v7 = vpop.f32.mrf.mxu0 }
  0xad   : > { %v311_v8 = vadd.f32 %v812_v6, %v310_v7 }
  0xaf   : > { %322 = vst [vmem:[#allocation2 + $0x10] sm:$0xff] %v311_v8 }
  0xb2   : > { %v319_v9 = vpop.f32.mrf.mxu2 }
  0xb3   : > { %v320_v10 = vadd.f32 %v812_v6, %v319_v9 }
  0xb4   : > { %v313_v11 = vpop.f32.mrf.mxu0 }
  0xb5   : > { %v314_v12 = vadd.f32 %v812_v6, %v313_v11  ;;  %325 = vst [vmem:[#allocation2 + $0x8] sm:$0xff] %v320_v10 }
  0xb7   : > { %323 = vst [vmem:[#allocation2] sm:$0xff] %v314_v12 }
  0xbb   : > { %329 = sbr.rel (%p703_p1) target bundleno = 195 (0xc3), region = 52 }
  0xbc   : > { %v316_v13 = vpop.f32.mrf.mxu0 }
  0xbd   : > { %v317_v14 = vadd.f32 %v812_v6, %v316_v13 }
  0xbf   : > { %324 = vst [vmem:[#allocation2 + $0x18] sm:$0xff] %v317_v14 }
  0xc0   : > { %vm330_vm1 = vcmask 261120   ;;  %v1011_v15 = vmov 0.0  }
  0xc1   : > { %331 = vst.msk [vmem:[#allocation3] sm:$0xff] %vm330_vm1, %v1011_v15 }
  0xc2   : > { %332 = vst.msk [vmem:[#allocation4] sm:$0xff] %vm330_vm1, %v1011_v15 }
  0xc3 PF: > { %v343_v16 = vld [vmem:[#allocation10 + $0x18] sm:$0xff]  ;;  %v342_v17 = vld [vmem:[#allocation10 + $0x10] sm:$0xff]  ;;  %v341_v18 = vld [vmem:[#allocation10 + $0x8] sm:$0xff]  ;;  %vm347_vm2 = vcmask 261120   ;;  %v333_v21 = vlaneseq  ;;  %v1012_v24 = vmov 0.5   ;;  %s1013_s29 = smov 64  }
  0xc4   : > { %363 = vmatpush.msra.mxu1 %v343_v16  ;;  %418 = vmatpush.msrb.mxu2 %v343_v16  ;;  %v340_v19 = vld [vmem:[#allocation10] sm:$0xff]  ;;  %v346_v23 = vld [vmem:[#allocation2 + $0x10] sm:$0xff]  ;;  %s1014_s9 = smov 32   ;;  %v507_v12 = vld [vmem:[#allocation2 + $0x8] sm:$0xff]  ;;  %s1015_s10 = smov 96  }
  0xc5   : > { %470 = vmatpush.msra.mxu3 %v343_v16  ;;  %v334_v22 = vand.u32 127, %v333_v21  ;;  %v403_v44 = vld [vmem:[#allocation2] sm:$0xff]  ;;  %s717_s27 = sshll.u32 %s997_s18, 5  ;;  %s578_s8 = sshll.u32 %s1167_s23, 4  ;;  %s579_s8 = int_to_ptr.vmem [resolvable:$true] %s578_s8 }
  0xc6   : > { %364 = vmatpush.msra.mxu1 %v342_v17  ;;  %419 = vmatpush.msrb.mxu2 %v342_v17  ;;  %s577_s7 = scalar_lea.hbm %s1260_s4, %s717_s27  ;;  %s565_s12 = scalar_lea.sflag [#allocation7], %s1148_s14 }
  0xc7   : > { %471 = vmatpush.msra.mxu3 %v342_v17  ;;  %vm335_vm3 = vcmp.ge.s32.totalorder %v334_v22, 64  ;;  %vm336_vm4 = vcmp.lt.s32.totalorder %v334_v22, 96  ;;  %s580_s11 = sshll.u32 %s577_s7, 4  ;;  %s939_s1 = scalar_lea.hbm %s1260_s4, 64  ;;  %s581_s11 = int_to_ptr.hbm [resolvable:$true] %s580_s11 }
  0xc8   : > { %365 = vmatpush.msra.mxu1 %v341_v18  ;;  %v344_v20 = vld [vmem:[#allocation3] sm:$0xff]  ;;  %420 = vmatpush.msrb.mxu2 %v341_v18  ;;  %vm337_vm5 = vmand %vm335_vm3, %vm336_vm4  ;;  %s933_s26 = sshra.s32 %s581_s11, 4  ;;  %s934_s26 = int_to_ptr.hbm [resolvable:$true] %s933_s26 }
  0xc9   : > { %472 = vmatpush.msra.mxu3 %v341_v18  ;;  %v1171_v25 = vsel %vm337_vm5, 1.0, %v1012_v24  ;;  %v1174_v30 = vsel %vm337_vm5, 0.0, %v1012_v24  ;;  %v345_v33 = vld [vmem:[#allocation4] sm:$0xff]  ;;  %v455_v60 = vld [vmem:[#allocation2 + $0x18] sm:$0xff]  ;;  %s935_s28 = scalar_lea.hbm %s934_s26, 32  ;;  %p940_p12 = scmp.lt.s32.totalorder %s934_s26, %s1260_s4 }
  0xca   : > { %366 = vmatpush.msra.mxu1 %v340_v19  ;;  %421 = vmatpush.msrb.mxu2 %v340_v19  ;;  %p936_p3 = scmp.ne.s32.totalorder %s934_s26, %s935_s28  ;;  %p941_p13 = scmp.lt.s32.totalorder %s939_s1, %s935_s28 }
  0xcb   : > { %704 = vmatmul.msk.f32.vlgmr.msra.gmra.mxu1 %vm347_vm2, %v344_v20  ;;  %473 = vmatpush.msra.mxu3 %v340_v19 }
  0xcc   : > { %522 = vmatpush.msrb.mxu1 %v343_v16  ;;  %p937_p7 = pnand %p936_p3, %p1125_p2  ;;  %p942_p0 = por %p941_p13, %p940_p12 }
  0xce   : > { %523 = vmatpush.msrb.mxu1 %v342_v17  ;;  %p938_p11 = pneg %p937_p7 }
  0xd0   : > { %524 = vmatpush.msrb.mxu1 %v341_v18  ;;  %p943_p4 = pnand %p942_p0, %p938_p11 }
  0xd2   : > { %525 = vmatpush.msrb.mxu1 %v340_v19 }
 0x148   : > { %v368_v26 = vpop.f32.mrf.mxu1 }
 0x149   : > { %v371_v27 = vadd.f32 %v368_v26, %v346_v23 }
 0x14b   : > { %v372_v28 = vmul.f32 %v371_v27, %v1171_v25 }
 0x14d   : > { %813 = vtanh.f32 %v372_v28 }
 0x153   : > { %v814_v29 = vpop.eup %813 }
 0x154   : > { %v374_v31 = vmul.f32 %v814_v29, %v1171_v25 }
 0x156   : > { %v375_v32 = vadd.f32 %v374_v31, %v1174_v30 }
 0x158   : > { %382 = vrot.lane.b32.xlu0 %v375_v32, %s1013_s29 }
 0x160   : > { %377 = vrot.lane.b32.xlu0 %v345_v33, %s1014_s9 }
 0x1ca   : > { %v383_v34 = vpop.permute.xlu0 %382 }
 0x1cb   : > { %v385_v35 = vmul.f32 %v383_v34, %v375_v32 }
 0x1cd   : > { %387 = vrot.lane.b32.xlu1 %v385_v35, %s1014_s9 }
 0x1d2   : > { %v378_v36 = vpop.permute.xlu0 %377 }
 0x1d3   : > { %v380_v37 = vmul.f32 %v378_v36, %v375_v32 }
 0x23f   : > { %v388_v38 = vpop.permute.xlu1 %387 }
 0x240   : > { %v390_v39 = vadd.f32 %v388_v38, %v380_v37 }
 0x242   : > { %815 = vtanh.f32 %v390_v39 }
 0x248   : > { %v816_v40 = vpop.eup %815 }
 0x249   : > { %393 = vrot.lane.b32.xlu1 %v816_v40, %s1013_s29 }
 0x2bb   : > { %v394_v41 = vpop.permute.xlu1 %393 }
 0x2bc   : > { %v396_v42 = vmul.f32 %v394_v41, %v375_v32 }
 0x2be   : > { %398 = vrot.lane.b32.xlu2 %v396_v42, %s1014_s9 }
 0x318   : > { %v399_v43 = vpop.permute.xlu2 %398 }
 0x319   : > { %401 = vst.msk [vmem:[%s1167_s23] sm:$0xff] %vm347_vm2, %v399_v43  ;;  %705 = vmatmul.msk.f32.vlgmr.msrb.gmra.mxu2 %vm347_vm2, %v399_v43 }
 0x39c   : > { %v423_v45 = vpop.f32.mrf.mxu2 }
 0x39d   : > { %v426_v46 = vadd.f32 %v423_v45, %v403_v44 }
 0x39f   : > { %v427_v47 = vmul.f32 %v426_v46, %v1171_v25 }
 0x3a1   : > { %817 = vtanh.f32 %v427_v47 }
 0x3a7   : > { %v818_v48 = vpop.eup %817 }
 0x3a8   : > { %v429_v49 = vmul.f32 %v818_v48, %v1171_v25 }
 0x3aa   : > { %v430_v50 = vadd.f32 %v429_v49, %v1174_v30 }
 0x3ac   : > { %433 = vrot.lane.b32.xlu2 %v430_v50, %s1013_s29  ;;  %v431_v53 = vmul.f32 %v430_v50, %v390_v39 }
 0x406   : > { %v434_v51 = vpop.permute.xlu2 %433 }
 0x407   : > { %v436_v52 = vmul.f32 %v434_v51, %v430_v50 }
 0x409   : > { %438 = vrot.lane.b32.xlu0 %v436_v52, %s1014_s9 }
 0x47b   : > { %v439_v54 = vpop.permute.xlu0 %438 }
 0x47c   : > { %v441_v55 = vadd.f32 %v439_v54, %v431_v53 }
 0x47e   : > { %819 = vtanh.f32 %v441_v55 }
 0x484   : > { %v820_v56 = vpop.eup %819 }
 0x485   : > { %444 = vrot.lane.b32.xlu1 %v820_v56, %s1013_s29 }
 0x4f7   : > { %v445_v57 = vpop.permute.xlu1 %444 }
 0x4f8   : > { %v447_v58 = vmul.f32 %v445_v57, %v430_v50 }
 0x4fa   : > { %449 = vrot.lane.b32.xlu2 %v447_v58, %s1014_s9 }
 0x554   : > { %v450_v59 = vpop.permute.xlu2 %449 }
 0x555   : > { %706 = vst.msk [vmem:[%s1167_s23 + $0x8] sm:$0xff] %vm347_vm2, %v450_v59  ;;  %707 = vmatmul.msk.f32.vlgmr.msra.gmra.mxu3 %vm347_vm2, %v450_v59 }
 0x5d8   : > { %v475_v61 = vpop.f32.mrf.mxu3 }
 0x5d9   : > { %v478_v62 = vadd.f32 %v475_v61, %v455_v60 }
 0x5db   : > { %v479_v63 = vmul.f32 %v478_v62, %v1171_v25 }
 0x5dd   : > { %821 = vtanh.f32 %v479_v63 }
 0x5e3   : > { %v822_v0 = vpop.eup %821 }
 0x5e4   : > { %v481_v1 = vmul.f32 %v822_v0, %v1171_v25 }
 0x5e6   : > { %v482_v2 = vadd.f32 %v481_v1, %v1174_v30 }
 0x5e8   : > { %485 = vrot.lane.b32.xlu0 %v482_v2, %s1013_s29  ;;  %v483_v5 = vmul.f32 %v482_v2, %v441_v55 }
 0x65a   : > { %v486_v3 = vpop.permute.xlu0 %485 }
 0x65b   : > { %v488_v4 = vmul.f32 %v486_v3, %v482_v2 }
 0x65d   : > { %490 = vrot.lane.b32.xlu1 %v488_v4, %s1014_s9 }
 0x6cf   : > { %v491_v6 = vpop.permute.xlu1 %490 }
 0x6d0   : > { %v493_v7 = vadd.f32 %v491_v6, %v483_v5 }
 0x6d2   : > { %823 = vtanh.f32 %v493_v7 }
 0x6d8   : > { %v824_v8 = vpop.eup %823 }
 0x6d9   : > { %496 = vrot.lane.b32.xlu2 %v824_v8, %s1013_s29 }
 0x733   : > { %v497_v9 = vpop.permute.xlu2 %496 }
 0x734   : > { %v499_v10 = vmul.f32 %v497_v9, %v482_v2 }
 0x736   : > { %501 = vrot.lane.b32.xlu0 %v499_v10, %s1014_s9 }
 0x7a8   : > { %v502_v11 = vpop.permute.xlu0 %501 }
 0x7a9   : > { %708 = vst.msk [vmem:[%s1167_s23 + $0x10] sm:$0xff] %vm347_vm2, %v502_v11  ;;  %709 = vmatmul.msk.f32.vlgmr.msrb.gmra.mxu1 %vm347_vm2, %v502_v11 }
 0x826   : > { %v527_v13 = vpop.f32.mrf.mxu1 }
 0x827   : > { %v530_v14 = vadd.f32 %v527_v13, %v507_v12 }
 0x829   : > { %v531_v15 = vmul.f32 %v530_v14, %v1171_v25 }
 0x82b   : > { %825 = vtanh.f32 %v531_v15 }
 0x831   : > { %v826_v16 = vpop.eup %825 }
 0x832   : > { %v533_v17 = vmul.f32 %v826_v16, %v1171_v25 }
 0x834   : > { %v534_v18 = vadd.f32 %v533_v17, %v1174_v30 }
 0x836   : > { %537 = vrot.lane.b32.xlu1 %v534_v18, %s1013_s29  ;;  %v535_v21 = vmul.f32 %v534_v18, %v493_v7 }
 0x8a8   : > { %v538_v19 = vpop.permute.xlu1 %537 }
 0x8a9   : > { %v540_v20 = vmul.f32 %v538_v19, %v534_v18 }
 0x8ab   : > { %542 = vrot.lane.b32.xlu2 %v540_v20, %s1014_s9 }
 0x905   : > { %v543_v22 = vpop.permute.xlu2 %542 }
 0x906   : > { %v545_v23 = vadd.f32 %v543_v22, %v535_v21 }
 0x908   : > { %827 = vtanh.f32 %v545_v23  ;;  %560 = vrot.lane.b32.xlu2 %v545_v23, %s1015_s10 }
 0x90e   : > { %v828_v24 = vpop.eup %827 }
 0x90f   : > { %548 = vrot.lane.b32.xlu0 %v828_v24, %s1013_s29 }
 0x962   : > { %v561_v25 = vpop.permute.xlu2 %560 }
 0x963   : > { %563 = vst.msk [vmem:[#allocation4] sm:$0xff] %vm347_vm2, %v561_v25 }
 0x981   : > { %v549_v26 = vpop.permute.xlu0 %548 }
 0x982   : > { %v551_v27 = vmul.f32 %v549_v26, %v534_v18 }
 0x984   : > { %553 = vrot.lane.b32.xlu1 %v551_v27, %s1014_s9 }
 0x9f6   : > { %v554_v28 = vpop.permute.xlu1 %553 }
 0x9f7   : > { %710 = vst.msk [vmem:[%s1167_s23 + $0x18] sm:$0xff] %vm347_vm2, %v554_v28 }
 0x9f8   : > { %558 = vst.msk [vmem:[#allocation3] sm:$0xff] %vm347_vm2, %v554_v28 }
 0x9f9   : > { %946 = shalt.err (!%p943_p4)
}
 0x9fa   : > { %s1016_s14 = smov 128   ;;  %s1017_s23 = smov 8  }
 0x9fb   : > { %730 = dma.vmem_to_hbm [thread:$0]  (%p1125_p2), %s579_s8, 512, %s581_s11, %s565_s12, %s1016_s14, %s1016_s14, %s1017_s23  }
 0x9fc PF: > { %s595_s9 = sand.u32 1, %s985_s15   ;;  %p744_p6 = pnand %p690_p10, %p1090_p5 }
 0x9fd   : > { %s596_s10 = scalar_lea.sflag [#allocation7], %s595_s9 }
 0x9fe   : > { %p745_p8 = pneg %p744_p6 }
 0xa00   : > { %980 = dma.done.wait (%p745_p8), %s596_s10, 512  }
 0xa01   : > { %982 = vsyncadd (%p745_p8), %s596_s10, 4294966784  ;;  %s21_s20 = sadd.s32 1, %s1005_s20   ;;  %s1270_s15 = smov %s989_s16 }
 0xa02   : > { %p18_p9 = scmp.ge.s32.totalorder %s21_s20, 4   ;;  %s1271_s16 = smov %s993_s17 }
 0xa03   : > { %s1272_s17 = smov %s1135_s30  ;;  %s1273_s18 = smov %s1001_s19 }
 0xa04   : > { %s1274_s19 = smov %s1276_s13  ;;  %20 = sbr.rel (!%p18_p9) target bundleno = 9 (0x9), region = 99 }
 0xa09   :  { %602 = vsyncpa [#allocation6], 1 }
 0xa0a   :  { %604 = vsyncpa [#allocation6 + $0x1], 1 }
 0xa0b   :  { %605 = vsyncpa [#allocation9], 1 }
 0xa0c   :  { %606 = vsyncpa [#allocation7], 1 }
 0xa0d   :  { %608 = vsyncpa [#allocation7 + $0x1], 1 }

</bundles_post_ra>
